<compile_context>
chip_gen: v6e
topology: v6e:2x2x1
jax: 0.10.0
libtpu: 0.0.40
codegen_flags: <defaults>
</compile_context>

<pallas_src>
import functools

import jax
import jax.numpy as jnp
from jax import lax
from jax.experimental import pallas as pl
from jax.experimental.pallas import tpu as pltpu

LANES = 128
SUBLANES = 8
NUM_SLICES = 2                        # leading grid axis (megacore / v7x split)
_VMEM_LIMIT_BYTES = 32 * 1024 * 1024  # explicit scoped-VMEM budget


def _tpu_kind():
    try:
        return jax.devices()[0].device_kind.lower()
    except Exception:
        return ""


_KIND = _tpu_kind()
_IS_V7 = ("v7" in _KIND) or ("7x" in _KIND)

# Tile size per generation (perf review):
#   v6e / v7x : 8192 rows -> 4 MiB/input tile, 16 MiB double-buffered.
#   v5e / old / unknown : 4096 rows -> 2 MiB/input tile, 8 MiB buffered
#   (stays safe even under the 16 MiB default scoped VMEM on v5e).
ROWS_PER_BLOCK = 8192 if (_IS_V7 or "v6" in _KIND) else 4096

# Only CORE_PARALLEL actually splits a grid axis across v7x's 2 TensorCores;
# plain "parallel" is kept elsewhere (it is also how v4/v5p megacore shards).
_DIM_SEMANTICS = ((pltpu.CORE_PARALLEL, pltpu.ARBITRARY) if _IS_V7
                  else ("parallel", "arbitrary"))


# ----------------------------------------------------------------------------
# Kernels
# ----------------------------------------------------------------------------
def _loss_kernel_single(o_ref, t_ref, sse_ref, sae_ref):
    """Whole array in one block; scalar partial sums written to SMEM."""
    d = o_ref[...].astype(jnp.float32) - t_ref[...].astype(jnp.float32)
    sse_ref[0, 0] = jnp.sum(d * d)
    sae_ref[0, 0] = jnp.sum(jnp.abs(d))


def _loss_kernel_tiled(o_ref, t_ref, sq_out, ab_out, *, rpb, bpc, rows_valid,
                       needs_mask):
    """Streaming partial sums.

    Grid = (NUM_SLICES, bpc).  Each leading-axis slice accumulates directly
    into its own lane-dense (1,8,128) output blocks (resident across the
    inner "arbitrary" axis); mask work only runs on tail/overhang blocks.
    """
    p = pl.program_id(0)
    i = pl.program_id(1)

    @pl.when(i == 0)
    def _():
        sq_out[...] = jnp.zeros_like(sq_out)
        ab_out[...] = jnp.zeros_like(ab_out)

    d = o_ref[...].astype(jnp.float32) - t_ref[...].astype(jnp.float32)
    sq = d * d
    ab = jnp.abs(d)

    def fold(x):
        # (rpb, 128) -> (1, 8, 128) with pure vreg-wise VALU adds (no XLU).
        return x.reshape(rpb // SUBLANES, SUBLANES, LANES).sum(
            axis=0, keepdims=True)

    if not needs_mask:
        sq_out[...] += fold(sq)
        ab_out[...] += fold(ab)
    else:
        gid = p * bpc + i                 # logical (unclamped) block id
        block_end = (gid + 1) * rpb

        @pl.when(block_end <= rows_valid)     # interior block: no mask work
        def _():
            sq_out[...] += fold(sq)
            ab_out[...] += fold(ab)

        @pl.when(block_end > rows_valid)      # ragged tail / overhang block
        def _():
            row = gid * rpb + lax.broadcasted_iota(jnp.int32, (rpb, LANES), 0)
            m = row < rows_valid
            sq_out[...] += fold(jnp.where(m, sq, 0.0))
            ab_out[...] += fold(jnp.where(m, ab, 0.0))


# ----------------------------------------------------------------------------
# Wrappers
# ----------------------------------------------------------------------------
def _to_2d(x):
    """View as (rows, 128).  Free reshape when numel % 128 == 0 (no copy)."""
    flat = x.reshape(-1)
    rem = flat.shape[0] % LANES
    if rem:
        # TODO(synk): rare ragged-numel case still pays one O(N) pad copy; a
        # zero-copy path would need a manual-DMA (memory_space=pl.ANY) kernel.
        flat = jnp.pad(flat, (0, LANES - rem))
    return flat.reshape(-1, LANES)


def _single_block_sums(o2d, t2d):
    """Small input: one block, no grid, scalar SMEM outputs."""
    sse, sae = pl.pallas_call(
        _loss_kernel_single,
        out_shape=(jax.ShapeDtypeStruct((1, 1), jnp.float32),
                   jax.ShapeDtypeStruct((1, 1), jnp.float32)),
        out_specs=(pl.BlockSpec(memory_space=pltpu.MemorySpace.SMEM),
                   pl.BlockSpec(memory_space=pltpu.MemorySpace.SMEM)),
        compiler_params=pltpu.CompilerParams(
            vmem_limit_bytes=_VMEM_LIMIT_BYTES),
    )(o2d, t2d)
    return sse[0, 0], sae[0, 0]


def _tiled_sums(o2d, t2d, rows):
    """Returns (sum(d^2), sum(|d|)) for large inputs via the streaming grid."""
    rpb = ROWS_PER_BLOCK
    total_blocks = pl.cdiv(rows, rpb)
    bpc = pl.cdiv(total_blocks, NUM_SLICES)            # blocks per slice
    needs_mask = (rows % rpb != 0) or (bpc * NUM_SLICES != total_blocks)

    kernel = functools.partial(_loss_kernel_tiled, rpb=rpb, bpc=bpc,
                               rows_valid=rows, needs_mask=needs_mask)

    def in_map(p, i):
        gid = p * bpc + i
        # Clamp so overhang blocks (fully masked in-kernel) stay in bounds.
        return (jnp.minimum(gid, total_blocks - 1), 0)

    sq_parts, ab_parts = pl.pallas_call(
        kernel,
        out_shape=(
            jax.ShapeDtypeStruct((NUM_SLICES, SUBLANES, LANES), jnp.float32),
            jax.ShapeDtypeStruct((NUM_SLICES, SUBLANES, LANES), jnp.float32),
        ),
        grid_spec=pltpu.PrefetchScalarGridSpec(
            num_scalar_prefetch=0,
            grid=(NUM_SLICES, bpc),
            in_specs=[
                pl.BlockSpec((rpb, LANES), in_map),
                pl.BlockSpec((rpb, LANES), in_map),
            ],
            out_specs=[
                pl.BlockSpec((1, SUBLANES, LANES), lambda p, i: (p, 0, 0)),
                pl.BlockSpec((1, SUBLANES, LANES), lambda p, i: (p, 0, 0)),
            ],
        ),
        compiler_params=pltpu.CompilerParams(
            dimension_semantics=_DIM_SEMANTICS,
            vmem_limit_bytes=_VMEM_LIMIT_BYTES,
        ),
    )(o2d, t2d)
    # Tiny (2,8,128) cross-lane reductions happen here, outside the kernel.
    return jnp.sum(sq_parts), jnp.sum(ab_parts)


@functools.partial(jax.jit, static_argnames=("w_mse", "w_l1"))
def weighted_loss(output, target, *, w_mse=1.0, w_l1=0.5):
    """Scalar loss = w_mse * mean((o-t)^2) + w_l1 * mean(|o-t|)."""
    n_elems = output.size
    o2d = _to_2d(output)
    t2d = _to_2d(target)
    rows = o2d.shape[0]

    if rows <= ROWS_PER_BLOCK:
        sse, sae = _single_block_sums(o2d, t2d)
    else:
        sse, sae = _tiled_sums(o2d, t2d, rows)

    inv_n = 1.0 / float(n_elems)
    return w_mse * (sse * inv_n) + w_l1 * (sae * inv_n)


class Loss:
    """JAX/Pallas equivalent of the PyTorch `Loss` module (wraps WeightedLoss)."""

    _SUPPORTED = ("mse", "l1")

    def __init__(self, loss_conf_dict):
        unknown = [k for k in loss_conf_dict if k not in self._SUPPORTED]
        if unknown:
            # TODO(synk): add more component losses if the real WeightedLoss
            # needs them (SSIM, perceptual, ...).
            raise ValueError(f"Unsupported loss terms: {unknown}")
        self.w_mse = float(loss_conf_dict.get("mse", 0.0))
        self.w_l1 = float(loss_conf_dict.get("l1", 0.0))

    def __call__(self, output, target):
        return weighted_loss(output, target, w_mse=self.w_mse, w_l1=self.w_l1)


if __name__ == "__main__":
    key = jax.random.PRNGKey(0)
    k1, k2, k3, k4, k5, k6 = jax.random.split(key, 6)

    loss_fn = Loss({"mse": 1.0, "l1": 0.5})

    def ref_loss(o, t, w_mse=1.0, w_l1=0.5):
        d = o.astype(jnp.float32) - t.astype(jnp.float32)
        return w_mse * jnp.mean(d * d) + w_l1 * jnp.mean(jnp.abs(d))

    # Small NCHW inputs: batch=2, channels=4, spatial=16x16 (single-block path).
    output = jax.random.normal(k1, (2, 4, 16, 16), dtype=jnp.float32)
    target = jax.random.normal(k2, (2, 4, 16, 16), dtype=jnp.float32)
    loss = jax.block_until_ready(loss_fn(output, target))
    ref = ref_loss(output, target)
    assert jnp.allclose(loss, ref, rtol=1e-4, atol=1e-5), (loss, ref)

    # Ragged numel (not a multiple of 128): single-block path with pad fallback.
    ro = jax.random.normal(k3, (2, 3, 5, 7), dtype=jnp.float32)
    rt = jax.random.normal(k4, (2, 3, 5, 7), dtype=jnp.float32)
    loss_r = jax.block_until_ready(loss_fn(ro, rt))
    ref_r = ref_loss(ro, rt)
    assert jnp.allclose(loss_r, ref_r, rtol=1e-4, atol=1e-5), (loss_r, ref_r)

    # Larger input: 16640 rows > ROWS_PER_BLOCK on every generation, so the
    # tiled path runs and exercises init, interior (unmasked) blocks, the
    # masked ragged-tail block and the masked overhang block on slice 1.
    big_o = jax.random.normal(k5, (2, 4, 512, 520), dtype=jnp.float32)
    big_t = jax.random.normal(k6, (2, 4, 512, 520), dtype=jnp.float32)
    loss_b = jax.block_until_ready(loss_fn(big_o, big_t))
    ref_b = ref_loss(big_o, big_t)
    assert jnp.allclose(loss_b, ref_b, rtol=1e-4, atol=1e-5), (loss_b, ref_b)

    print("KERNEL_OK")
</pallas_src>

<mosaic_0001>
module attributes {stable_mosaic.version = 11 : i64} {
  func.func @_loss_kernel_single(%arg0: memref<16x128xf32, #tpu.memory_space<vmem>>, %arg1: memref<16x128xf32, #tpu.memory_space<vmem>>, %arg2: memref<1x1xf32, #tpu.memory_space<smem>>, %arg3: memref<1x1xf32, #tpu.memory_space<smem>>) attributes {dimension_semantics = [], scalar_prefetch = 0 : i64, scratch_operands = 0 : i64, tpu.core_type = #tpu.core_type<tc>} {
    %c0 = arith.constant 0 : index
    %c0_0 = arith.constant 0 : index
    %0 = vector.load %arg0[%c0, %c0_0] : memref<16x128xf32, #tpu.memory_space<vmem>>, vector<16x128xf32>
    %c0_1 = arith.constant 0 : index
    %c0_2 = arith.constant 0 : index
    %1 = vector.load %arg1[%c0_1, %c0_2] : memref<16x128xf32, #tpu.memory_space<vmem>>, vector<16x128xf32>
    %2 = arith.subf %0, %1 : vector<16x128xf32>
    %3 = arith.mulf %2, %2 : vector<16x128xf32>
    %4 = vector.shape_cast %3 : vector<16x128xf32> to vector<1x16x128xf32>
    %cst = arith.constant dense<0.000000e+00> : vector<1xf32>
    %5 = vector.multi_reduction <add>, %4, %cst [1, 2] : vector<1x16x128xf32> to vector<1xf32>
    %6 = vector.shape_cast %5 : vector<1xf32> to vector<1x1x1xf32>
    %7 = vector.extract %6[0, 0, 0] : f32 from vector<1x1x1xf32>
    %c0_3 = arith.constant 0 : index
    %c0_4 = arith.constant 0 : index
    %8 = memref.load %arg2[%c0_3, %c0_4] : memref<1x1xf32, #tpu.memory_space<smem>>
    memref.store %7, %arg2[%c0_3, %c0_4] : memref<1x1xf32, #tpu.memory_space<smem>>
    %9 = math.absf %2 : vector<16x128xf32>
    %10 = vector.shape_cast %9 : vector<16x128xf32> to vector<1x16x128xf32>
    %cst_5 = arith.constant dense<0.000000e+00> : vector<1xf32>
    %11 = vector.multi_reduction <add>, %10, %cst_5 [1, 2] : vector<1x16x128xf32> to vector<1xf32>
    %12 = vector.shape_cast %11 : vector<1xf32> to vector<1x1x1xf32>
    %13 = vector.extract %12[0, 0, 0] : f32 from vector<1x1x1xf32>
    %c0_6 = arith.constant 0 : index
    %c0_7 = arith.constant 0 : index
    %14 = memref.load %arg3[%c0_6, %c0_7] : memref<1x1xf32, #tpu.memory_space<smem>>
    memref.store %13, %arg3[%c0_6, %c0_7] : memref<1x1xf32, #tpu.memory_space<smem>>
    return
  }
}

</mosaic_0001>

<bundles_post_ra>
// kernel: weighted_loss.1
= control target key start
LH: loop header
LB: loop body
LE: loop exit
PB: predicated region body
PF: predicated region fallthrough
CT: control target
= control target key end

     0   :  { %9 = vsyncpa [#allocation3], 0  ;;  %s140_s0 = inlined_call_operand.vmem [shape: f32[16,128], index: 0, kind: input, shape index: {}]   ;;  %s141_s1 = inlined_call_operand.vmem [shape: f32[16,128], index: 1, kind: input, shape index: {}]   ;;  %s142_s2 = inlined_call_operand.hbm [shape: f32[1,1], index: 2, kind: output, shape index: {0}]   ;;  %s143_s3 = inlined_call_operand.hbm [shape: f32[1,1], index: 3, kind: output, shape index: {1}]  }
   0x1   :  { %v15_v0 = vld [vmem:[%s140_s0] sm:$0xff]  ;;  %v16_v1 = vld [vmem:[%s140_s0 + $0x8] sm:$0xff] }
   0x2   :  { %v17_v2 = vld [vmem:[%s141_s1] sm:$0xff]  ;;  %v18_v3 = vld [vmem:[%s141_s1 + $0x8] sm:$0xff] }
   0x3   :  { %v19_v4 = vsub.f32 %v15_v0, %v17_v2 }
   0x4   :  { %10 = vsyncpa [#allocation5], 0  ;;  %v20_v5 = vsub.f32 %v16_v1, %v18_v3  ;;  %s100_s1 = smov [#allocation2]   ;;  %s101_s23 = smov [#allocation4]  }
   0x5   :  { %v21_v6 = vmul.f32 %v19_v4, %v19_v4  ;;  %v35_v8 = vand.u32 2147483647, %v19_v4 }
   0x6   :  { %v22_v7 = vmul.f32 %v20_v5, %v20_v5  ;;  %v36_v9 = vand.u32 2147483647, %v20_v5 }
   0x8   :  { %v23_v10 = vadd.f32 %v22_v7, %v21_v6  ;;  %v37_v11 = vadd.f32 %v36_v9, %v35_v8 }
   0xa   :  { %24 = vadd.xlane.f32.xlu0 %v23_v10 }
   0xe   :  { %38 = vadd.xlane.f32.xlu0 %v37_v11 }
  0x93   :  { %v25_v12 = vpop.xlane.xlu0 %24 }
  0x94   :  { %v26_v13 = vrot.slane %v25_v12, 4 }
  0x96   :  { %v27_v14 = vadd.f32 %v26_v13, %v25_v12 }
  0x97   :  { %v39_v15 = vpop.xlane.xlu0 %38 }
  0x98   :  { %v28_v16 = vrot.slane %v27_v14, 2  ;;  %v40_v17 = vrot.slane %v39_v15, 4 }
  0x9a   :  { %v41_v18 = vadd.f32 %v40_v17, %v39_v15  ;;  %v29_v19 = vadd.f32 %v28_v16, %v27_v14 }
  0x9c   :  { %v42_v20 = vrot.slane %v41_v18, 2  ;;  %v30_v21 = vrot.slane %v29_v19, 1 }
  0x9e   :  { %v43_v22 = vadd.f32 %v42_v20, %v41_v18  ;;  %v31_v23 = vadd.f32 %v30_v21, %v29_v19 }
  0xa0   :  { %74 = vpush %v31_v23  ;;  %v44_v24 = vrot.slane %v43_v22, 1 }
  0xa2   :  { %v45_v25 = vadd.f32 %v44_v24, %v43_v22 }
  0xa4   :  { %76 = vpush %v45_v25 }
  0xd1   :  { %s75_s0 = spop %74 }
  0xd2   :  { %34 = sst [smem:[#allocation2]] %s75_s0 }
  0xd3   :  { %56 = dma.smem_to_hbm %s100_s1, 16, %s142_s2, [#allocation3]  }
  0xd5   :  { %s77_s22 = spop %76 }
  0xd6   :  { %48 = sst [smem:[#allocation4]] %s77_s22 }
  0xd7   :  { %64 = dma.smem_to_hbm %s101_s23, 16, %s143_s3, [#allocation5]  }
  0xd8   :  { %96 = dma.done.wait [#allocation3], 16  }
  0xd9   :  { %97 = vsyncadd [#allocation3], 4294967280 }
  0xda   :  { %98 = dma.done.wait [#allocation5], 16  }
  0xdb   :  { %99 = vsyncadd [#allocation5], 4294967280 }
  0xdc   :  { %71 = sfence }
  0xdd   :  { %72 = vsyncpa [#allocation3], 1 }
  0xde   :  { %73 = vsyncpa [#allocation5], 1 }

</bundles_post_ra>
